<compile_context>
chip_gen: v7x
topology: tpu7x:2x2x1
jax: 0.10.0
libtpu: 0.0.40
codegen_flags: <defaults>
</compile_context>

<pallas_src>
import math
import numpy as np

import jax
import jax.numpy as jnp
from jax.experimental import pallas as pl
from jax.experimental.pallas import tpu as pltpu


# Function indices (order matches the PyTorch module's all_act_funcs list).
RELU, SIGMOID, TANH, GAUSSIAN, SIN, COS, ABS, IDENTITY = range(8)
NUM_FUNCS = 8

# Reference (exact) activation implementations, for the pure-JAX reference.
REF_FUNCS = (
    lambda x: jnp.maximum(x, 0.0),          # relu
    jax.nn.sigmoid,                          # sigmoid
    jnp.tanh,                                # tanh
    lambda x: jnp.exp(-0.5 * jnp.square(x)), # gaussian
    jnp.sin,                                 # sin
    jnp.cos,                                 # cos
    jnp.abs,                                 # abs
    lambda x: x,                             # identity
)

_HALF_PI = 0.5 * math.pi


# ----------------------------------------------------------------------------
# Kernel builder: `present` is a STATIC Python set of function indices that at
# least one node uses, so the select chain only contains active functions and
# unused transcendentals are never emitted.
# ----------------------------------------------------------------------------
def _make_kernel(present):
    present = frozenset(present)

    def kernel(idx_ref, x_ref, o_ref):
        x = x_ref[...]                 # (r_tile, C)
        idx = idx_ref[...]             # (1, C) int32, broadcasts in the wheres
        out = jnp.zeros_like(x)        # lanes with idx == -1 (disabled) stay 0

        # --- tanh group: sigmoid & tanh share a single EUP tanh push --------
        if SIGMOID in present and TANH in present:
            t = jnp.tanh(jnp.where(idx == SIGMOID, 0.5 * x, x))
            out = jnp.where(idx == TANH, t, out)
            out = jnp.where(idx == SIGMOID, 0.5 * (t + 1.0), out)
        elif TANH in present:
            out = jnp.where(idx == TANH, jnp.tanh(x), out)
        elif SIGMOID in present:
            out = jnp.where(idx == SIGMOID, 0.5 * (jnp.tanh(0.5 * x) + 1.0), out)

        # --- sin group: sin & cos share a single EUP sin push ---------------
        if SIN in present and COS in present:
            s = jnp.sin(jnp.where(idx == COS, x + _HALF_PI, x))
            out = jnp.where((idx == SIN) | (idx == COS), s, out)
        elif SIN in present:
            out = jnp.where(idx == SIN, jnp.sin(x), out)
        elif COS in present:
            out = jnp.where(idx == COS, jnp.cos(x), out)

        if GAUSSIAN in present:
            out = jnp.where(idx == GAUSSIAN, jnp.exp(-0.5 * x * x), out)
        if RELU in present:
            out = jnp.where(idx == RELU, jnp.maximum(x, 0.0), out)
        if ABS in present:
            out = jnp.where(idx == ABS, jnp.abs(x), out)
        if IDENTITY in present:
            out = jnp.where(idx == IDENTITY, x, out)

        o_ref[...] = out               # single full-tile store

    return kernel


# ----------------------------------------------------------------------------
# Wrapper. `mask` must be a concrete (host-readable) array: it is the fixed
# network structure in wann_genetic, so node indices / present-set are derived
# with numpy at trace time (static pruning).
# ----------------------------------------------------------------------------
def multi_activation_forward(x, mask, *, tile_bytes=4 * 1024 * 1024):
    B, N = x.shape
    mask_np = np.asarray(mask)
    assert mask_np.shape[0] == N and mask_np.shape[1] == NUM_FUNCS

    # The select-form kernel is exact only for one-hot (or all-zero) rows with
    # unit weights -- assert that cheaply on the host.
    nz_per_row = np.count_nonzero(mask_np, axis=1)
    assert np.all(nz_per_row <= 1), "mask must be one-hot (or all-zero) per node"
    assert np.all(mask_np[mask_np != 0] == 1.0), "nonzero mask entries must be 1"

    node_idx = np.argmax(mask_np != 0, axis=1).astype(np.int32)
    node_idx = np.where(nz_per_row > 0, node_idx, -1).astype(np.int32)
    present = tuple(sorted({int(f) for f in node_idx if f >= 0}))

    itemsize = jnp.dtype(x.dtype).itemsize
    sub = max(8, 32 // itemsize)          # dtype-aware sublane tile (8/16/32)

    # ---- layout selection: make the lane dimension dense and wide ----------
    total = B * N
    pad_cols = 0
    if N % 128 == 0:
        C, R = N, B
        xr = x
        lane_idx = node_idx
    else:
        C = None
        start = min(1024, total)
        start -= start % 128
        for cand in range(start, 0, -128):
            # row-major flatten keeps node index == lane % N when N | C
            if cand % N == 0 and total % cand == 0:
                C = cand
                break
        if C is not None:
            R = total // C
            xr = x.reshape(R, C)                       # free row-major reshape
            lane_idx = np.tile(node_idx, C // N)
        else:
            # Fallback: pad the node/lane dim to a multiple of 128 so stores
            # are full-lane; padded lanes carry idx = -1 (-> output 0).
            C = ((N + 127) // 128) * 128
            pad_cols = C - N
            R = B
            xr = jnp.pad(x, ((0, 0), (0, pad_cols)))
            lane_idx = np.concatenate(
                [node_idx, np.full((pad_cols,), -1, np.int32)])

    idx_row = jnp.asarray(lane_idx.reshape(1, C), dtype=jnp.int32)

    # ---- row tiling: ~tile_bytes tiles, >= 2 grid steps when splittable -----
    r_target = max(sub, (tile_bytes // (C * itemsize)) // sub * sub)
    if R <= sub:
        r_tile = R                          # full-dim block (always legal)
    else:
        # cap so the grid has at least 2 steps (megacore / pipelining)
        cap = ((R + 1) // 2 + sub - 1) // sub * sub
        r_tile = min(r_target, cap)
    grid = (pl.cdiv(R, r_tile),)            # ragged last block handled by Pallas

    tile_b = r_tile * C * itemsize
    vmem_limit = int(min(48 * 1024 * 1024, max(32 * 1024 * 1024, 5 * tile_b)))

    out = pl.pallas_call(
        _make_kernel(present),
        out_shape=jax.ShapeDtypeStruct((R, C), x.dtype),
        grid_spec=pltpu.PrefetchScalarGridSpec(
            num_scalar_prefetch=0,
            grid=grid,
            in_specs=[
                # per-lane activation index: tiny, resident every step
                pl.BlockSpec((1, C), lambda i: (0, 0)),
                # x row tile
                pl.BlockSpec((r_tile, C), lambda i: (i, 0)),
            ],
            out_specs=pl.BlockSpec((r_tile, C), lambda i: (i, 0)),
        ),
        compiler_params=pltpu.CompilerParams(
            dimension_semantics=("parallel",),     # shard row tiles across TCs
            vmem_limit_bytes=vmem_limit,
        ),
    )(idx_row, xr)

    if pad_cols:
        out = out[:, :N]
    return out.reshape(B, N)


# ----------------------------------------------------------------------------
# Pure-JAX reference: direct transcription of the PyTorch forward.
# ----------------------------------------------------------------------------
def multi_activation_ref(x, mask):
    out = jnp.zeros_like(x)
    for f in range(NUM_FUNCS):
        out = out + REF_FUNCS[f](x) * mask[..., f]
    return out


if __name__ == "__main__":
    key = jax.random.PRNGKey(0)

    cases = [
        # packed C=256, all 8 funcs (merged tanh/sin groups exercised)
        dict(batch=8,    nodes=32,  mod=NUM_FUNCS, dtype=jnp.float32,  atol=1e-5),
        # static pruning: only {relu, sigmoid, tanh} emitted
        dict(batch=8,    nodes=32,  mod=3,         dtype=jnp.float32,  atol=1e-5),
        # fallback: lane-pad 24 -> 128, idx padded with -1
        dict(batch=5,    nodes=24,  mod=5,         dtype=jnp.float32,  atol=1e-5),
        # packed C=640, R=15 -> 2-step grid with ragged last block
        dict(batch=300,  nodes=32,  mod=NUM_FUNCS, dtype=jnp.float32,  atol=1e-5),
        # N already a multiple of 128
        dict(batch=16,   nodes=128, mod=NUM_FUNCS, dtype=jnp.float32,  atol=1e-5),
        # bf16: dtype-aware sublane tile (16), packed C=1024, 2-step grid
        dict(batch=1024, nodes=32,  mod=NUM_FUNCS, dtype=jnp.bfloat16, atol=3e-2),
    ]

    for c in cases:
        B, N = c["batch"], c["nodes"]
        key, sub = jax.random.split(key)
        x = jax.random.normal(sub, (B, N), dtype=jnp.float32).astype(c["dtype"])

        node_act = np.arange(N) % c["mod"]
        mask_np = np.zeros((N, NUM_FUNCS), dtype=np.float32)
        mask_np[np.arange(N), node_act] = 1.0
        mask = jnp.asarray(mask_np)

        out = jax.block_until_ready(multi_activation_forward(x, mask))
        ref = multi_activation_ref(x.astype(jnp.float32), mask)

        assert out.shape == (B, N) and out.dtype == c["dtype"]
        err = float(jnp.max(jnp.abs(out.astype(jnp.float32) - ref)))
        assert err <= c["atol"], f"case {c}: max abs err = {err}"

    print("KERNEL_OK")
</pallas_src>

<mosaic_0001>
module attributes {stable_mosaic.version = 11 : i64} {
  func.func @kernel(%arg0: i32, %arg1: memref<1x256xi32, #tpu.memory_space<vmem>>, %arg2: memref<1x256xf32, #tpu.memory_space<vmem>>, %arg3: memref<1x256xf32, #tpu.memory_space<vmem>>) attributes {dimension_semantics = [#tpu.dimension_semantics<parallel>], iteration_bounds = array<i64: 1>, scalar_prefetch = 0 : i64, scratch_operands = 0 : i64, tpu.core_type = #tpu.core_type<tc>, window_params = [{pipeline_mode = #tpu.pipeline_mode<synchronous>, transform_indices = @transform_0, window_bounds = array<i64: 1, 256>}, {transform_indices = @transform_1, window_bounds = array<i64: 1, 256>}, {transform_indices = @transform_2, window_bounds = array<i64: 1, 256>}]} {
    %c0 = arith.constant 0 : index
    %c0_0 = arith.constant 0 : index
    %0 = vector.load %arg2[%c0, %c0_0] : memref<1x256xf32, #tpu.memory_space<vmem>>, vector<1x256xf32>
    %c0_1 = arith.constant 0 : index
    %c0_2 = arith.constant 0 : index
    %1 = vector.load %arg1[%c0_1, %c0_2] : memref<1x256xi32, #tpu.memory_space<vmem>>, vector<1x256xi32>
    %cst = arith.constant 0.000000e+00 : f32
    %2 = vector.broadcast %cst : f32 to vector<1x256xf32>
    %c1_i32 = arith.constant 1 : i32
    %3 = vector.broadcast %c1_i32 : i32 to vector<1x256xi32>
    %4 = arith.cmpi eq, %1, %3 : vector<1x256xi32>
    %cst_3 = arith.constant 5.000000e-01 : f32
    %5 = vector.broadcast %cst_3 : f32 to vector<1x256xf32>
    %6 = arith.mulf %5, %0 : vector<1x256xf32>
    %7 = arith.select %4, %6, %0 : vector<1x256xi1>, vector<1x256xf32>
    %8 = math.tanh %7 : vector<1x256xf32>
    %c2_i32 = arith.constant 2 : i32
    %9 = vector.broadcast %c2_i32 : i32 to vector<1x256xi32>
    %10 = arith.cmpi eq, %1, %9 : vector<1x256xi32>
    %11 = arith.select %10, %8, %2 : vector<1x256xi1>, vector<1x256xf32>
    %c1_i32_4 = arith.constant 1 : i32
    %12 = vector.broadcast %c1_i32_4 : i32 to vector<1x256xi32>
    %13 = arith.cmpi eq, %1, %12 : vector<1x256xi32>
    %cst_5 = arith.constant 1.000000e+00 : f32
    %14 = vector.broadcast %cst_5 : f32 to vector<1x256xf32>
    %15 = arith.addf %8, %14 : vector<1x256xf32>
    %cst_6 = arith.constant 5.000000e-01 : f32
    %16 = vector.broadcast %cst_6 : f32 to vector<1x256xf32>
    %17 = arith.mulf %16, %15 : vector<1x256xf32>
    %18 = arith.select %13, %17, %11 : vector<1x256xi1>, vector<1x256xf32>
    %c5_i32 = arith.constant 5 : i32
    %19 = vector.broadcast %c5_i32 : i32 to vector<1x256xi32>
    %20 = arith.cmpi eq, %1, %19 : vector<1x256xi32>
    %cst_7 = arith.constant 1.57079637 : f32
    %21 = vector.broadcast %cst_7 : f32 to vector<1x256xf32>
    %22 = arith.addf %0, %21 : vector<1x256xf32>
    %23 = arith.select %20, %22, %0 : vector<1x256xi1>, vector<1x256xf32>
    %24 = math.sin %23 : vector<1x256xf32>
    %c4_i32 = arith.constant 4 : i32
    %25 = vector.broadcast %c4_i32 : i32 to vector<1x256xi32>
    %26 = arith.cmpi eq, %1, %25 : vector<1x256xi32>
    %c5_i32_8 = arith.constant 5 : i32
    %27 = vector.broadcast %c5_i32_8 : i32 to vector<1x256xi32>
    %28 = arith.cmpi eq, %1, %27 : vector<1x256xi32>
    %29 = arith.ori %26, %28 : vector<1x256xi1>
    %30 = arith.select %29, %24, %18 : vector<1x256xi1>, vector<1x256xf32>
    %c3_i32 = arith.constant 3 : i32
    %31 = vector.broadcast %c3_i32 : i32 to vector<1x256xi32>
    %32 = arith.cmpi eq, %1, %31 : vector<1x256xi32>
    %cst_9 = arith.constant -5.000000e-01 : f32
    %33 = vector.broadcast %cst_9 : f32 to vector<1x256xf32>
    %34 = arith.mulf %33, %0 : vector<1x256xf32>
    %35 = arith.mulf %34, %0 : vector<1x256xf32>
    %36 = math.exp %35 : vector<1x256xf32>
    %37 = arith.select %32, %36, %30 : vector<1x256xi1>, vector<1x256xf32>
    %c0_i32 = arith.constant 0 : i32
    %38 = vector.broadcast %c0_i32 : i32 to vector<1x256xi32>
    %39 = arith.cmpi eq, %1, %38 : vector<1x256xi32>
    %cst_10 = arith.constant 0.000000e+00 : f32
    %40 = vector.broadcast %cst_10 : f32 to vector<1x256xf32>
    %41 = arith.maximumf %0, %40 : vector<1x256xf32>
    %42 = arith.select %39, %41, %37 : vector<1x256xi1>, vector<1x256xf32>
    %c6_i32 = arith.constant 6 : i32
    %43 = vector.broadcast %c6_i32 : i32 to vector<1x256xi32>
    %44 = arith.cmpi eq, %1, %43 : vector<1x256xi32>
    %45 = math.absf %0 : vector<1x256xf32>
    %46 = arith.select %44, %45, %42 : vector<1x256xi1>, vector<1x256xf32>
    %c7_i32 = arith.constant 7 : i32
    %47 = vector.broadcast %c7_i32 : i32 to vector<1x256xi32>
    %48 = arith.cmpi eq, %1, %47 : vector<1x256xi32>
    %49 = arith.select %48, %0, %46 : vector<1x256xi1>, vector<1x256xf32>
    %c0_11 = arith.constant 0 : index
    %c0_12 = arith.constant 0 : index
    %50 = vector.load %arg3[%c0_11, %c0_12] : memref<1x256xf32, #tpu.memory_space<vmem>>, vector<1x256xf32>
    tpu.vector_store %arg3[%c0_11, %c0_12], %49 {strides = array<i32>} : memref<1x256xf32, #tpu.memory_space<vmem>>, vector<1x256xf32>,
    return
  }
  func.func @transform_0(%arg0: i32) -> (i32, i32) {
    %c0_i32 = arith.constant 0 : i32
    %c0_i32_0 = arith.constant 0 : i32
    %c0_i32_1 = arith.constant 0 : i32
    return %c0_i32, %c0_i32_0 : i32, i32
  }
  func.func @transform_1(%arg0: i32) -> (i32, i32) {
    %c0_i32 = arith.constant 0 : i32
    %c0_i32_0 = arith.constant 0 : i32
    return %arg0, %c0_i32 : i32, i32
  }
  func.func @transform_2(%arg0: i32) -> (i32, i32) {
    %c0_i32 = arith.constant 0 : i32
    %c0_i32_0 = arith.constant 0 : i32
    return %arg0, %c0_i32 : i32, i32
  }
}

</mosaic_0001>

<bundles_post_ra>
// kernel: tpu_custom_call.1
= control target key start
LH: loop header
LB: loop body
LE: loop exit
PB: predicated region body
PF: predicated region fallthrough
CT: control target
= control target key end

     0   :  { %7 = vsyncpa [#allocation3], 0  ;;  %s353_s0 = inlined_call_operand.hbm [shape: s32[1,256], index: 0, kind: input, shape index: {}]   ;;  %s354_s1 = inlined_call_operand.vmem [shape: f32[1,256], index: 1, kind: input, shape index: {}]   ;;  %s355_s2 = inlined_call_operand.hbm [shape: f32[1,256], index: 2, kind: output, shape index: {}]  }
   0x1   :  { %8 = vsyncpa [#allocation4], 0  ;;  %s251_s9 = smov [#allocation2]   ;;  %s203_s13 = scalar_lea.hbm %s353_s0, 32 }
   0x2   :  { %s15_s10 = sshll.u32 %s251_s9, 4  ;;  %p204_p0 = scmp.ne.s32.totalorder %s353_s0, %s203_s13  ;;  %s16_s10 = int_to_ptr.vmem [resolvable:$true] %s15_s10 }
   0x3   :  { %p207_p1 = scmp.lt.u32.totalorder %s203_s13, %s353_s0 }
   0x5   :  { %p209_p2 = pnand %p207_p1, %p204_p0 }
   0x7   :  { %212 = shalt.err (!%p209_p2)
}
   0x8   :  { %s213_s18 = scalar_lea.vmem %s16_s10, 32  ;;  %p218_p4 = scmp.lt.s32.totalorder %s16_s10, %s16_s10 }
   0x9   :  { %p214_p3 = scmp.ne.s32.totalorder %s16_s10, %s213_s18  ;;  %p219_p5 = scmp.lt.s32.totalorder %s213_s18, %s213_s18 }
   0xb   :  { %p220_p6 = por %p219_p5, %p218_p4 }
   0xd   :  { %p221_p7 = pnand %p220_p6, %p214_p3 }
   0xf   :  { %224 = shalt.err (!%p221_p7)
}
  0x10   :  { %18 = dma.hbm_to_vmem [thread:$0]  %s353_s0, 32, %s16_s10, [#allocation3]  }
  0x11   :  { %247 = dma.done.wait [#allocation3], 32  }
  0x12   :  { %248 = vsyncadd [#allocation3], 4294967264  ;;  %v289_v0 = vld [vmem:[%s354_s1] sm:$0x3]  ;;  %v252_v15 = vmov 683565275  }
  0x13   :  { %v291_v1 = vld [vmem:[#allocation2] sm:$0x3]  ;;  %v36_v2 = vadd.f32 1.5707964, %v289_v0  ;;  %v253_v17 = vmov 2475754826  }
  0x14   :  { %vm35_vm0 = vcmp.eq.s32.totalorder %v291_v1, 5  ;;  %vm142_vm1 = vcmp.eq.s32.totalorder %v291_v1, 4  ;;  %v254_v19 = vmov 2131351028   ;;  %v255_v21 = vmov 2102212464  }
  0x15   :  { %vm296_vm2 = vmor %vm142_vm1, %vm35_vm0  ;;  %v301_v4 = vsel %vm35_vm0, %v36_v2, %v289_v0  ;;  %v256_v23 = vmov 920167782   ;;  %v257_v31 = vmov 1326507024   ;;  %vm26_vm10 = vcmp.eq.s32.totalorder %v291_v1, 1  ;;  %s258_s0 = smov [#allocation5]  }
  0x16   :  { %v41_v5 = vand.u32 2139095040, %v301_v4  ;;  %v38_v8 = vand.u32 2147483647, %v301_v4  ;;  %vm40_vm11 = vcmp.lt.s32.totalorder %v301_v4, 0  ;;  %vm30_vm13 = vcmp.eq.s32.totalorder %v291_v1, 2  ;;  %s170_s1 = sshll.u32 %s258_s0, 4  ;;  %s171_s1 = int_to_ptr.vmem [resolvable:$true] %s170_s1 }
  0x17   :  { %vm130_vm1 = vweird.f32 %v301_v4  ;;  %s225_s23 = scalar_lea.vmem %s171_s1, 32  ;;  %p230_p9 = scmp.lt.s32.totalorder %s171_s1, %s171_s1 }
  0x18   :  { %v42_v6 = vshrl.u32 %v41_v5, 23  ;;  %v45_v11 = vand.u32 8388607, %v38_v8  ;;  %vm39_vm12 = vcmp.le.f32.partialorder %v38_v8, 0.7853982  ;;  %p226_p8 = scmp.ne.s32.totalorder %s171_s1, %s225_s23  ;;  %p231_p10 = scmp.lt.s32.totalorder %s225_s23, %s225_s23 }
  0x1a   :  { %v179_v7 = vadd.s32 4294967169, %v42_v6  ;;  %v46_v25 = vor.u32 8388608, %v45_v11  ;;  %p232_p11 = por %p231_p10, %p230_p9 }
  0x1c   :  { %v48_v9 = vadd.s32 1, %v179_v7  ;;  %v86_v40 = vshll.u32 %v46_v25, 8  ;;  %p233_p12 = pnand %p232_p11, %p226_p8 }
  0x1e   :  { %vm49_vm3 = vcmp.gt.s32.totalorder %v48_v9, 0 }
  0x1f   :  { %v50_v10 = vsel %vm49_vm3, %v48_v9, 0  ;;  %vm145_vm3 = vcmp.eq.s32.totalorder %v291_v1, 3 }
  0x20   :  { %v52_v12 = vand.u32 31, %v50_v10  ;;  %v51_v13 = vshrl.u32 %v50_v10, 5 }
  0x22   :  { %v53_v14 = vsub.s32 32, %v52_v12  ;;  %v55_v16 = vshll.u32 %v252_v15, %v52_v12  ;;  %v58_v18 = vshll.u32 %v253_v17, %v52_v12  ;;  %v61_v20 = vshll.u32 %v254_v19, %v52_v12 }
  0x23   :  { %v64_v22 = vshll.u32 %v255_v21, %v52_v12  ;;  %v67_v24 = vshll.u32 %v256_v23, %v52_v12  ;;  %vm70_vm4 = vcmp.lt.s32.totalorder %v51_v13, 1  ;;  %vm73_vm5 = vcmp.lt.s32.totalorder %v51_v13, 4 }
  0x24   :  { %v54_v26 = vshrl.u32 %v252_v15, %v53_v14  ;;  %v56_v27 = vshrl.u32 %v253_v17, %v53_v14  ;;  %v59_v28 = vshrl.u32 %v254_v19, %v53_v14  ;;  %v62_v29 = vshrl.u32 %v255_v21, %v53_v14 }
  0x25   :  { %v65_v30 = vshrl.u32 %v256_v23, %v53_v14  ;;  %v68_v32 = vshrl.u32 %v257_v31, %v53_v14  ;;  %vm72_vm6 = vcmp.lt.s32.totalorder %v51_v13, 3  ;;  %vm71_vm7 = vcmp.lt.s32.totalorder %v51_v13, 2 }
  0x26   :  { %v57_v33 = vor.u32 %v56_v27, %v55_v16  ;;  %v60_v34 = vor.u32 %v59_v28, %v58_v18  ;;  %v63_v35 = vor.u32 %v62_v29, %v61_v20  ;;  %v27_v13 = vmul.f32 0.5, %v289_v0 }
  0x27   :  { %v66_v36 = vor.u32 %v65_v30, %v64_v22  ;;  %v69_v37 = vor.u32 %v68_v32, %v67_v24  ;;  %v146_v23 = vmul.f32 -0.5, %v289_v0 }
  0x28   :  { %v74_v38 = vsel %vm70_vm4, %v54_v26, %v57_v33  ;;  %v78_v39 = vsel %vm70_vm4, %v57_v33, %v60_v34  ;;  %v75_v41 = vsel %vm73_vm5, %v63_v35, 2102212464  ;;  %v82_v43 = vsel %vm70_vm4, %v60_v34, %v63_v35 }
  0x29   :  { %v79_v42 = vsel %vm73_vm5, %v66_v36, 920167782  ;;  %v83_v44 = vsel %vm73_vm5, %v69_v37, 1326507024  ;;  %v76_v45 = vsel %vm72_vm6, %v60_v34, %v75_v41  ;;  %v28_v18 = vsel %vm26_vm10, %v27_v13, %v289_v0 }
  0x2a   :  { %v80_v46 = vsel %vm72_vm6, %v63_v35, %v79_v42  ;;  %v84_v47 = vsel %vm72_vm6, %v66_v36, %v83_v44  ;;  %v77_v48 = vsel %vm71_vm7, %v74_v38, %v76_v45  ;;  %195 = vtanh.f32 %v28_v18 }
  0x2b   :  { %v81_v49 = vsel %vm71_vm7, %v78_v39, %v80_v46  ;;  %v85_v50 = vsel %vm71_vm7, %v82_v43, %v84_v47  ;;  %v93_v55 = vmul.u32 %v86_v40, %v77_v48  ;;  %v147_v27 = vmul.f32 %v146_v23, %v289_v0 }
  0x2c   :  { %v307_v51 = vmul.u32.u64.low %v86_v40, %v85_v50  ;;  %v308_v52 = vmul.u32.u64.high %v86_v40, %v85_v50, %v307_v51  ;;  %v310_v53 = vmul.u32.u64.low %v86_v40, %v81_v49  ;;  %v311_v54 = vmul.u32.u64.high %v86_v40, %v81_v49, %v310_v53 }
  0x2d   :  { %v148_v31 = vmul.f32 1.442695, %v147_v27  ;;  %v152_v46 = vmax.f32 %v289_v0, 0.0  ;;  %v159_v47 = vlaneseq  ;;  %vm151_vm4 = vcmp.eq.s32.totalorder %v291_v1, 0 }
  0x2e   :  { %vm95_vm8 = vc.u32 %v308_v52, %v310_v53  ;;  %v96_v56 = vadd.s32 1, %v311_v54  ;;  %v94_v7 = vadd.s32 %v310_v53, %v308_v52  ;;  %v155_v49 = vand.u32 2147483647, %v289_v0 }
  0x2f   :  { %vm154_vm5 = vcmp.eq.s32.totalorder %v291_v1, 6  ;;  %vm157_vm6 = vcmp.eq.s32.totalorder %v291_v1, 7  ;;  %vm161_vm7 = vcmp.lt.s32.totalorder %v159_v47, 256 }
  0x30   :  { %v97_v57 = vsel %vm95_vm8, %v96_v56, %v311_v54 }
  0x31   :  { %v98_v58 = vadd.s32 %v97_v57, %v93_v55 }
  0x33   :  { %v99_v59 = vadd.s32 536870912, %v98_v58 }
  0x34   :  { %v196_v33 = vpop.eup %195 }
  0x35   :  { %v100_v60 = vshrl.u32 %v99_v59, 30  ;;  %v32_v34 = vadd.f32 1.0, %v196_v33  ;;  %v31_v38 = vsel %vm30_vm13, %v196_v33, 0.0 }
  0x37   :  { %v101_v61 = vshll.u32 %v100_v60, 30  ;;  %v124_v22 = vsub.s32 4, %v100_v60  ;;  %v33_v8 = vmul.f32 0.5, %v32_v34 }
  0x39   :  { %v102_v62 = vsub.s32 %v98_v58, %v101_v61  ;;  %v125_v26 = vsel %vm40_vm11, %v124_v22, %v100_v60  ;;  %v34_v42 = vsel %vm26_vm10, %v33_v8, %v31_v38 }
  0x3a   :  { %v127_v30 = vsel %vm39_vm12, 0, %v125_v26 }
  0x3b   :  { %v104_v63 = vsub.s32 0, %v102_v62  ;;  %v131_v32 = vadd.s32 3, %v127_v30 }
  0x3d   :  { %v180_v2 = vmin.u32 %v104_v63, %v102_v62  ;;  %v132_v35 = vand.u32 3, %v131_v32 }
  0x3f   :  { %v106_v5 = vclz %v180_v2  ;;  %vm137_vm14 = vcmp.eq.s32.totalorder %v132_v35, 2  ;;  %vm134_vm15 = vcmp.eq.s32.totalorder %v132_v35, 0  ;;  %vm133_vm0 = vcmp.lt.s32.totalorder %v132_v35, 2 }
  0x41   :  { %v181_v6 = vadd.s32 4294967294, %v106_v5 }
  0x43   :  { %vm182_vm9 = vcmp.lt.s32.totalorder %v181_v6, 0 }
  0x44   :  { %v109_v9 = vsel %vm182_vm9, 0, %v181_v6 }
  0x45   :  { %v110_v10 = vsub.s32 32, %v109_v9  ;;  %v111_v11 = vshll.u32 %v102_v62, %v109_v9  ;;  %v114_v12 = vsub.s32 4294967266, %v109_v9 }
  0x47   :  { %v112_v14 = vshrl.u32 %v94_v7, %v110_v10  ;;  %v115_v15 = vadd.s32 127, %v114_v12 }
  0x49   :  { %v113_v16 = vor.u32 %v112_v14, %v111_v11  ;;  %v116_v17 = vshll.u32 %v115_v15, 23 }
  0x4b   :  { %v117_v19 = vor.u32 4788187, %v116_v17  ;;  %v120_v20 = vcvt.s32.f32 %v113_v16 }
  0x4d   :  { %v118_v21 = vand.u32 2147483647, %v117_v19 }
  0x4f   :  { %v121_v24 = vmul.f32 %v120_v20, %v118_v21 }
  0x51   :  { %v122_v25 = vxor.u32 2147483648, %v121_v24 }
  0x53   :  { %v123_v28 = vsel %vm40_vm11, %v122_v25, %v121_v24 }
  0x54   :  { %v126_v29 = vsel %vm39_vm12, %v301_v4, %v123_v28 }
  0x55   :  { %197 = vcosq.f32 %v126_v29 }
  0x56   :  { %199 = vsinq.f32 %v126_v29 }
  0x57   :  { %201 = vpow2.f32 %v148_v31 }
  0x5f   :  { %v198_v36 = vpop.eup %197 }
  0x60   :  { %v200_v37 = vpop.eup %199  ;;  %v138_v39 = vxor.u32 2147483648, %v198_v36 }
  0x61   :  { %v135_v40 = vxor.u32 2147483648, %v200_v37  ;;  %v202_v44 = vpop.eup %201 }
  0x62   :  { %v139_v41 = vsel %vm137_vm14, %v138_v39, %v200_v37 }
  0x63   :  { %v136_v43 = vsel %vm134_vm15, %v198_v36, %v135_v40 }
  0x64   :  { %v140_v45 = vsel %vm133_vm0, %v136_v43, %v139_v41 }
  0x65   :  { %v141_v48 = vsel %vm130_vm1, nan, %v140_v45 }
  0x66   :  { %v144_v4 = vsel %vm296_vm2, %v141_v48, %v34_v42 }
  0x67   :  { %v150_v50 = vsel %vm145_vm3, %v202_v44, %v144_v4 }
  0x68   :  { %v153_v51 = vsel %vm151_vm4, %v152_v46, %v150_v50 }
  0x69   :  { %v156_v52 = vsel %vm154_vm5, %v155_v49, %v153_v51 }
  0x6a   :  { %v158_v53 = vsel %vm157_vm6, %v289_v0, %v156_v52 }
  0x6b   :  { %163 = vst.msk [vmem:[#allocation5] sm:$0x3] %vm161_vm7, %v158_v53 }
  0x6c   :  { %236 = shalt.err (!%p233_p12)
}
  0x6d   :  { %s237_s26 = scalar_lea.hbm %s355_s2, 32 }
  0x6e   :  { %p238_p13 = scmp.ne.s32.totalorder %s355_s2, %s237_s26  ;;  %p241_p0 = scmp.lt.u32.totalorder %s237_s26, %s355_s2 }
  0x70   :  { %p243_p1 = pnand %p241_p0, %p238_p13 }
  0x72   :  { %246 = shalt.err (!%p243_p1)
}
  0x73   :  { %173 = dma.vmem_to_hbm [thread:$0]  %s171_s1, 32, %s355_s2, [#allocation4]  }
  0x74   :  { %249 = dma.done.wait [#allocation4], 32  }
  0x75   :  { %250 = vsyncadd [#allocation4], 4294967264 }
  0x76   :  { %177 = vsyncpa [#allocation3], 1 }
  0x77   :  { %178 = vsyncpa [#allocation4], 1 }

</bundles_post_ra>
